<compile_context>
chip_gen: v5e
topology: v5e:2x2
jax: 0.10.0
libtpu: 0.0.40
codegen_flags: <defaults>
</compile_context>

<pallas_src>
import functools

import jax
import jax.numpy as jnp
from jax.experimental import pallas as pl
from jax.experimental.pallas import tpu as pltpu


def _ce_label_smooth_kernel(
    logits_ref, targets_ref, out_ref, acc_ref, *, epsilon, num_classes, n_total, tile_n
):
    i = pl.program_id(0)

    @pl.when(i == 0)
    def _init():
        acc_ref[0, 0] = jnp.float32(0.0)

    x = logits_ref[...].astype(jnp.float32)            # (TN, C)
    tgt = targets_ref[...]                             # (TN, 1) int32

    # Numerically-stable pieces of log-softmax along classes (axis=1).
    m = jnp.max(x, axis=1, keepdims=True)              # (TN, 1)
    shifted = x - m                                    # (TN, C)
    lse = jnp.log(jnp.sum(jnp.exp(shifted), axis=1, keepdims=True))  # (TN, 1)

    # Algebraic form of smoothed CE (no one-hot / smoothed / log_probs arrays):
    #   loss_row = -(1-eps) * logp[target] - (eps/C) * sum_c logp
    # with logp[target] = shifted[target] - lse,
    #      sum_c logp   = sum_c shifted - C * lse.
    col = jax.lax.broadcasted_iota(jnp.int32, x.shape, 1)                    # (TN, C)
    tgt_shift = jnp.sum(jnp.where(col == tgt, shifted, 0.0), axis=1, keepdims=True)
    tgt_logp = tgt_shift - lse                                               # (TN, 1)
    row_logp_sum = jnp.sum(shifted, axis=1, keepdims=True) - num_classes * lse

    loss_row = -(1.0 - epsilon) * tgt_logp - (epsilon / num_classes) * row_logp_sum

    # Mask rows beyond N (last tile may be padded with garbage).
    row_ids = i * tile_n + jax.lax.broadcasted_iota(jnp.int32, loss_row.shape, 0)
    loss_row = jnp.where(row_ids < n_total, loss_row, 0.0)

    acc_ref[0, 0] += jnp.sum(loss_row)

    @pl.when(i == pl.num_programs(0) - 1)
    def _finalize():
        out_ref[0, 0] = acc_ref[0, 0] / jnp.float32(n_total)


def _pick_tile_rows(n, c, itemsize, budget_bytes=6 * 1024 * 1024):
    """Rows per tile: ~budget_bytes of logits per buffer, multiple of 8 sublanes."""
    if n <= 8:
        return n  # block equals the full batch dim — always legal
    rows = budget_bytes // max(1, c * itemsize)
    rows = max(8, min(rows, n))
    return (rows // 8) * 8


def cross_entropy_label_smooth(logits, targets, *, num_classes, epsilon, tile_n=None):
    """logits: [N, C] float (f32 or bf16), targets: [N] int — scalar f32 loss."""
    n, c = logits.shape
    assert c == num_classes
    itemsize = jnp.dtype(logits.dtype).itemsize
    targets2d = targets.astype(jnp.int32).reshape(n, 1)

    if tile_n is None:
        tile_n = _pick_tile_rows(n, c, itemsize)
    n_tiles = pl.cdiv(n, tile_n)

    kernel = functools.partial(
        _ce_label_smooth_kernel,
        epsilon=float(epsilon),
        num_classes=int(num_classes),
        n_total=int(n),
        tile_n=int(tile_n),
    )

    cost = pl.CostEstimate(
        flops=6 * n * c,                       # sub/compare/select/reduce passes
        transcendentals=n * c + n,             # exp per element + log per row
        bytes_accessed=n * c * itemsize + n * 4 + 4,
    )

    out = pl.pallas_call(
        kernel,
        out_shape=jax.ShapeDtypeStruct((1, 1), jnp.float32),
        grid=(n_tiles,),
        in_specs=[
            pl.BlockSpec((tile_n, c), lambda i: (i, 0)),   # logits tile in VMEM
            pl.BlockSpec((tile_n, 1), lambda i: (i, 0)),   # targets tile in VMEM
        ],
        out_specs=pl.BlockSpec(memory_space=pltpu.SMEM),   # scalar loss in SMEM
        scratch_shapes=[pltpu.SMEM((1, 1), jnp.float32)],  # running accumulator
        compiler_params=pltpu.CompilerParams(
            dimension_semantics=("arbitrary",),            # shared accumulator
            vmem_limit_bytes=32 * 1024 * 1024,             # safe on v5e/v6e/v7x
        ),
        cost_estimate=cost,
    )(logits, targets2d)
    return out[0, 0]


def _reference(logits, targets, num_classes, epsilon):
    lp = jax.nn.log_softmax(logits.astype(jnp.float32), axis=1)
    onehot = jax.nn.one_hot(targets, num_classes, dtype=jnp.float32)
    smoothed = (1.0 - epsilon) * onehot + epsilon / num_classes
    return jnp.sum(jnp.mean(-smoothed * lp, axis=0))


if __name__ == "__main__":
    key = jax.random.PRNGKey(0)
    epsilon = 0.1

    # Case 1: batch not a multiple of the tile → exercises multi-step grid,
    # SMEM accumulation, and padded-row masking (tile_n=8, grid of 3 steps).
    batch, num_classes = 20, 16
    k1, k2, k3 = jax.random.split(key, 3)
    logits = jax.random.normal(k1, (batch, num_classes), dtype=jnp.float32)
    targets = jax.random.randint(k2, (batch,), 0, num_classes, dtype=jnp.int32)

    loss = cross_entropy_label_smooth(
        logits, targets, num_classes=num_classes, epsilon=epsilon, tile_n=8
    )
    loss = jax.block_until_ready(loss)
    ref = _reference(logits, targets, num_classes, epsilon)
    assert jnp.allclose(loss, ref, atol=1e-5, rtol=1e-5), (loss, ref)

    # Case 2: auto tile selection, different shape.
    batch2, num_classes2 = 16, 32
    k4, k5 = jax.random.split(k3)
    logits2 = jax.random.normal(k4, (batch2, num_classes2), dtype=jnp.float32)
    targets2 = jax.random.randint(k5, (batch2,), 0, num_classes2, dtype=jnp.int32)

    loss2 = cross_entropy_label_smooth(
        logits2, targets2, num_classes=num_classes2, epsilon=epsilon
    )
    loss2 = jax.block_until_ready(loss2)
    ref2 = _reference(logits2, targets2, num_classes2, epsilon)
    assert jnp.allclose(loss2, ref2, atol=1e-5, rtol=1e-5), (loss2, ref2)

    print("KERNEL_OK")
</pallas_src>

<mosaic_0001>
module attributes {stable_mosaic.version = 11 : i64} {
  func.func @_ce_label_smooth_kernel(%arg0: i32, %arg1: memref<8x16xf32, #tpu.memory_space<vmem>>, %arg2: memref<8x1xi32, #tpu.memory_space<vmem>>, %arg3: memref<1x1xf32, #tpu.memory_space<smem>>, %arg4: memref<1x1xf32, #tpu.memory_space<smem>>) attributes {dimension_semantics = [#tpu.dimension_semantics<arbitrary>], iteration_bounds = array<i64: 3>, scalar_prefetch = 0 : i64, scratch_operands = 1 : i64, tpu.core_type = #tpu.core_type<tc>, window_params = [{transform_indices = @transform_0, window_bounds = array<i64: 8, 16>}, {transform_indices = @transform_1, window_bounds = array<i64: 8, 1>}, {transform_indices = @transform_2, window_bounds = array<i64: 1, 1>}]} {
    %c0_i32 = arith.constant 0 : i32
    %0 = arith.cmpi eq, %arg0, %c0_i32 : i32
    %1 = arith.extui %0 : i1 to i32
    %c0_i32_0 = arith.constant 0 : i32
    %2 = arith.cmpi ne, %1, %c0_i32_0 : i32
    scf.if %2 {
      %cst_18 = arith.constant 0.000000e+00 : f32
      %c0_19 = arith.constant 0 : index
      %c0_20 = arith.constant 0 : index
      %49 = memref.load %arg4[%c0_19, %c0_20] : memref<1x1xf32, #tpu.memory_space<smem>>
      memref.store %cst_18, %arg4[%c0_19, %c0_20] : memref<1x1xf32, #tpu.memory_space<smem>>
    } else {
    }
    %c0 = arith.constant 0 : index
    %c0_1 = arith.constant 0 : index
    %3 = vector.load %arg1[%c0, %c0_1] : memref<8x16xf32, #tpu.memory_space<vmem>>, vector<8x16xf32>
    %c0_2 = arith.constant 0 : index
    %c0_3 = arith.constant 0 : index
    %4 = vector.load %arg2[%c0_2, %c0_3] : memref<8x1xi32, #tpu.memory_space<vmem>>, vector<8x1xi32>
    %cst = arith.constant dense<0xFF800000> : vector<8xf32>
    %5 = vector.multi_reduction <maximumf>, %3, %cst [1] : vector<8x16xf32> to vector<8xf32>
    %6 = vector.shape_cast %5 : vector<8xf32> to vector<8x1xf32>
    %7 = vector.broadcast %6 : vector<8x1xf32> to vector<8x16xf32>
    %8 = arith.subf %3, %7 : vector<8x16xf32>
    %9 = math.exp %8 : vector<8x16xf32>
    %cst_4 = arith.constant dense<0.000000e+00> : vector<8xf32>
    %10 = vector.multi_reduction <add>, %9, %cst_4 [1] : vector<8x16xf32> to vector<8xf32>
    %11 = vector.shape_cast %10 : vector<8xf32> to vector<8x1xf32>
    %12 = math.log %11 : vector<8x1xf32>
    %13 = tpu.iota {dimensions = array<i32: 1>} : vector<8x16xi32>
    %14 = vector.broadcast %4 : vector<8x1xi32> to vector<8x16xi32>
    %15 = arith.cmpi eq, %13, %14 : vector<8x16xi32>
    %cst_5 = arith.constant 0.000000e+00 : f32
    %16 = vector.broadcast %cst_5 : f32 to vector<8x16xf32>
    %17 = arith.select %15, %8, %16 : vector<8x16xi1>, vector<8x16xf32>
    %cst_6 = arith.constant dense<0.000000e+00> : vector<8xf32>
    %18 = vector.multi_reduction <add>, %17, %cst_6 [1] : vector<8x16xf32> to vector<8xf32>
    %19 = vector.shape_cast %18 : vector<8xf32> to vector<8x1xf32>
    %20 = arith.subf %19, %12 : vector<8x1xf32>
    %cst_7 = arith.constant dense<0.000000e+00> : vector<8xf32>
    %21 = vector.multi_reduction <add>, %8, %cst_7 [1] : vector<8x16xf32> to vector<8xf32>
    %22 = vector.shape_cast %21 : vector<8xf32> to vector<8x1xf32>
    %cst_8 = arith.constant 1.600000e+01 : f32
    %23 = vector.broadcast %cst_8 : f32 to vector<8x1xf32>
    %24 = arith.mulf %23, %12 : vector<8x1xf32>
    %25 = arith.subf %22, %24 : vector<8x1xf32>
    %cst_9 = arith.constant -0.899999976 : f32
    %26 = vector.broadcast %cst_9 : f32 to vector<8x1xf32>
    %27 = arith.mulf %26, %20 : vector<8x1xf32>
    %cst_10 = arith.constant 6.250000e-03 : f32
    %28 = vector.broadcast %cst_10 : f32 to vector<8x1xf32>
    %29 = arith.mulf %28, %25 : vector<8x1xf32>
    %30 = arith.subf %27, %29 : vector<8x1xf32>
    %c8_i32 = arith.constant 8 : i32
    %31 = arith.muli %arg0, %c8_i32 : i32
    %32 = tpu.iota {dimensions = array<i32: 0>} : vector<8x1xi32>
    %33 = vector.broadcast %31 : i32 to vector<8x1xi32>
    %34 = arith.addi %33, %32 : vector<8x1xi32>
    %c20_i32 = arith.constant 20 : i32
    %35 = vector.broadcast %c20_i32 : i32 to vector<8x1xi32>
    %36 = arith.cmpi slt, %34, %35 : vector<8x1xi32>
    %cst_11 = arith.constant 0.000000e+00 : f32
    %37 = vector.broadcast %cst_11 : f32 to vector<8x1xf32>
    %38 = arith.select %36, %30, %37 : vector<8x1xi1>, vector<8x1xf32>
    %c0_12 = arith.constant 0 : index
    %c0_13 = arith.constant 0 : index
    %39 = memref.load %arg4[%c0_12, %c0_13] : memref<1x1xf32, #tpu.memory_space<smem>>
    %40 = vector.shape_cast %38 : vector<8x1xf32> to vector<1x8x1xf32>
    %cst_14 = arith.constant dense<0.000000e+00> : vector<1xf32>
    %41 = vector.multi_reduction <add>, %40, %cst_14 [1, 2] : vector<1x8x1xf32> to vector<1xf32>
    %42 = vector.shape_cast %41 : vector<1xf32> to vector<1x1x1xf32>
    %43 = vector.extract %42[0, 0, 0] : f32 from vector<1x1x1xf32>
    %44 = arith.addf %39, %43 : f32
    %c0_15 = arith.constant 0 : index
    %c0_16 = arith.constant 0 : index
    %45 = memref.load %arg4[%c0_15, %c0_16] : memref<1x1xf32, #tpu.memory_space<smem>>
    memref.store %44, %arg4[%c0_15, %c0_16] : memref<1x1xf32, #tpu.memory_space<smem>>
    %c2_i32 = arith.constant 2 : i32
    %46 = arith.cmpi eq, %arg0, %c2_i32 : i32
    %47 = arith.extui %46 : i1 to i32
    %c0_i32_17 = arith.constant 0 : i32
    %48 = arith.cmpi ne, %47, %c0_i32_17 : i32
    scf.if %48 {
      %c0_18 = arith.constant 0 : index
      %c0_19 = arith.constant 0 : index
      %49 = memref.load %arg4[%c0_18, %c0_19] : memref<1x1xf32, #tpu.memory_space<smem>>
      %cst_20 = arith.constant 2.000000e+01 : f32
      %50 = arith.divf %49, %cst_20 : f32
      %c0_21 = arith.constant 0 : index
      %c0_22 = arith.constant 0 : index
      %51 = memref.load %arg3[%c0_21, %c0_22] : memref<1x1xf32, #tpu.memory_space<smem>>
      memref.store %50, %arg3[%c0_21, %c0_22] : memref<1x1xf32, #tpu.memory_space<smem>>
    } else {
    }
    return
  }
  func.func @transform_0(%arg0: i32) -> (i32, i32) {
    %c0_i32 = arith.constant 0 : i32
    %c0_i32_0 = arith.constant 0 : i32
    return %arg0, %c0_i32 : i32, i32
  }
  func.func @transform_1(%arg0: i32) -> (i32, i32) {
    %c0_i32 = arith.constant 0 : i32
    %c0_i32_0 = arith.constant 0 : i32
    return %arg0, %c0_i32 : i32, i32
  }
  func.func @transform_2(%arg0: i32) -> (i32, i32) {
    %c0_i32 = arith.constant 0 : i32
    %c0_i32_0 = arith.constant 0 : i32
    %c0_i32_1 = arith.constant 0 : i32
    return %c0_i32, %c0_i32_0 : i32, i32
  }
}

</mosaic_0001>

<bundles_post_ra>
// kernel: tpu_custom_call.1
= control target key start
LH: loop header
LB: loop body
LE: loop exit
PB: predicated region body
PF: predicated region fallthrough
CT: control target
= control target key end

     0   :  { %7 = vsyncpa [#allocation4], 0  ;;  %s370_s9 = smov 0   ;;  %s402_s0 = inlined_call_operand.vmem [shape: f32[20,16], index: 0, kind: input, shape index: {}]   ;;  %s403_s1 = inlined_call_operand.vmem [shape: s32[20,1], index: 1, kind: input, shape index: {}]   ;;  %s404_s2 = inlined_call_operand.hbm [shape: f32[1,1], index: 2, kind: output, shape index: {}]  }
   0x1 LB: > { %s376_s10 = sadd.s32 4294967295, %s349_s9   ;;  %p283_p0 = scmp.ge.s32.totalorder %s349_s9, 1  ;;  %s349_s9 = sphi %s370_s9, %s13_s9  }
   0x2   : > { %p116_p1 = scmp.lt.s32.totalorder %s349_s9, 4 }
   0x4   : > { %p117_p2 = pnand %p283_p0, %p116_p1 }
   0x5   : > { %p136_p3 = scmp.lt.s32.totalorder (!%p117_p2), %s376_s10, 2  ;;  %s287_s19 = sshll.u32 (!%p117_p2), %s376_s10, 3 }
   0x6   : > { %120 = sbr.rel (%p117_p2) target bundleno = 537 (0x219), region = 28  ;;  %p303_p4 = scmp.eq.s32.totalorder (!%p117_p2), %s376_s10, 0 }
   0x7   : > { %s352_s20 = smov (!%p117_p2), 0.0   ;;  %p288_p5 = scmp.ne.s32.totalorder (!%p117_p2), %s376_s10, 2 }
   0xb   : > { %v351_v0 = vmov 0   ;;  %s137_s11 = scalar_select %p136_p3, %s376_s10, 2  ;;  %vm152_vm0 = vcmask 130048   ;;  %v164_v10 = vlaneseq  ;;  %v186_v19 = vstv %s287_s19 }
   0xc   : > { %318 = vset.pattern.permute.xlu0 %v351_v0  ;;  %vm191_vm3 = vcmask 7168   ;;  %298 = sst [smem:[#allocation2]] (%p303_p4), %s352_s20 }
   0xd   : > { %s284_s12 = sshll.u32 %s137_s11, 3  ;;  %v165_v11 = vand.u32 127, %v164_v10  ;;  %v185_v17 = vshrl.u32 %v164_v10, 7  ;;  %s190_s21 = sld [smem:[#allocation2]] }
   0xe   : > { %s139_s15 = scalar_lea.vmem %s402_s0, %s284_s12  ;;  %s143_s18 = scalar_lea.vmem %s403_s1, %s284_s12 }
   0xf   : > { %v150_v1 = vld [vmem:[%s139_s15] sm:$0xff]  ;;  %v187_v24 = vadd.s32 %v186_v19, %v185_v17 }
  0x10   : > { %v153_v2 = vsel %vm152_vm0, %v150_v1, -inf  ;;  %v151_v3 = vld [vmem:[%s143_s18] sm:$0xff] }
  0x11   : > { %154 = vmax.xlane.f32.xlu0 %v153_v2  ;;  %vm188_vm2 = vcmp.lt.s32.totalorder %v187_v24, 20 }
  0x25   : > { %167 = vperm.xlu0 %318, %v151_v3  }
  0x84   : > { %v155_v4 = vpop.xlane.xlu0 %154 }
  0x85   : > { %v156_v5 = vsub.f32 %v150_v1, %v155_v4 }
  0x87   : > { %v157_v6 = vmul.f32 1.442695, %v156_v5  ;;  %v175_v7 = vsel %vm152_vm0, %v156_v5, 0.0 }
  0x88   : > { %176 = vadd.xlane.f32.xlu2 %v175_v7 }
  0x89   : > { %319 = vpow2.f32 %v157_v6 }
  0x8f   : > { %v320_v8 = vpop.eup %319 }
  0x90   : > { %v159_v9 = vsel %vm152_vm0, %v320_v8, 0.0 }
  0x91   : > { %160 = vadd.xlane.f32.xlu1 %v159_v9 }
  0x97   : > { %v168_v12 = vpop.permute.xlu0 %167 }
  0x98   : > { %vm169_vm1 = vcmp.eq.s32.totalorder %v165_v11, %v168_v12 }
  0x99   : > { %v170_v13 = vsel %vm169_vm1, %v156_v5, 0.0 }
  0x9a   : > { %v171_v14 = vsel %vm152_vm0, %v170_v13, 0.0 }
  0x9b   : > { %172 = vadd.xlane.f32.xlu1 %v171_v14 }
  0xfb   : > { %v177_v22 = vpop.xlane.xlu2 %176 }
 0x104   : > { %v161_v15 = vpop.xlane.xlu1 %160 }
 0x105   : > { %321 = vlog2.f32 %v161_v15 }
 0x10b   : > { %v322_v16 = vpop.eup %321 }
 0x10c   : > { %v163_v18 = vmul.f32 0.6931472, %v322_v16 }
 0x10e   : > { %v178_v20 = vmul.f32 16.0, %v163_v18  ;;  %v173_v21 = vpop.xlane.xlu1 %172 }
 0x10f   : > { %v174_v23 = vsub.f32 %v173_v21, %v163_v18 }
 0x110   : > { %v179_v25 = vsub.f32 %v177_v22, %v178_v20 }
 0x111   : > { %v180_v26 = vmul.f32 -0.9, %v174_v23 }
 0x112   : > { %v181_v27 = vmul.f32 0.00625, %v179_v25 }
 0x114   : > { %v182_v28 = vsub.f32 %v180_v26, %v181_v27 }
 0x116   : > { %v189_v29 = vsel %vm188_vm2, %v182_v28, 0.0 }
 0x117   : > { %v192_v30 = vsel %vm191_vm3, %v189_v29, 0.0 }
 0x118   : > { %193 = vadd.xlane.f32.xlu2 %v192_v30 }
 0x18b   : > { %v194_v31 = vpop.xlane.xlu2 %193 }
 0x18c   : > { %v195_v32 = vrot.slane %v194_v31, 4 }
 0x18e   : > { %v196_v33 = vadd.f32 %v195_v32, %v194_v31 }
 0x190   : > { %v197_v34 = vrot.slane %v196_v33, 2 }
 0x192   : > { %v198_v35 = vadd.f32 %v197_v34, %v196_v33 }
 0x194   : > { %v199_v36 = vrot.slane %v198_v35, 1 }
 0x196   : > { %v200_v37 = vadd.f32 %v199_v36, %v198_v35 }
 0x198   : > { %293 = vpush %v200_v37 }
 0x1c8   : > { %208 = sbr.rel (%p288_p5) target bundleno = 531 (0x213), region = 36 }
 0x1c9   : > { %s294_s22 = spop %293 }
 0x1ca   : > { %s202_s23 = sadd.f32 %s294_s22, %s190_s21 }
 0x1cc   : > { %204 = sst [smem:[#allocation2]] %s202_s23 }
 0x1cd   : > { %v353_v38 = vmov 20.0   ;;  %s209_s24 = sld [smem:[#allocation2]] }
 0x1ce   : > { %323 = vrcp.f32 %v353_v38 }
 0x1d4   : > { %v324_v39 = vpop.eup %323 }
 0x1d5   : > { %v211_v40 = vmul.f32 20.0, %v324_v39  ;;  %vm215_vm4 = vweird.f32 %v324_v39 }
 0x1d7   : > { %v212_v41 = vsub.f32 1.0, %v211_v40 }
 0x1d9   : > { %v213_v42 = vmul.f32 %v324_v39, %v212_v41 }
 0x1db   : > { %v214_v43 = vadd.f32 %v324_v39, %v213_v42 }
 0x1dd   : > { %v216_v44 = vsel %vm215_vm4, %v324_v39, %v214_v43 }
 0x1de   : > { %295 = vpush %v216_v44 }
 0x20f   : > { %s296_s25 = spop %295 }
 0x210   : > { %s218_s26 = smul.f32 %s296_s25, %s209_s24 }
 0x212   : > { %220 = sst [smem:[#allocation3]] %s218_s26 }
 0x213 PF: > { %p304_p6 = scmp.eq.s32.totalorder %s376_s10, 2  ;;  %s227_s29 = sshll.u32 %s404_s2, 4  ;;  %s228_s29 = int_to_ptr.hbm [resolvable:$true] %s227_s29 }
 0x214   : > { %s354_s30 = smov [#allocation3]  }
 0x215   : > { %300 = dma.smem_to_hbm (%p304_p6), %s354_s30, 16, %s228_s29, [#allocation4]  }
 0x216   : > { %344 = dma.done.wait (%p304_p6), [#allocation4], 16  }
 0x217   : > { %346 = vsyncadd (%p304_p6), [#allocation4], 4294967280 }
 0x218   : > { %236 = sfence }
 0x219 PF: > { %s13_s9 = sadd.s32 1, %s349_s9  }
 0x21a   : > { %p10_p7 = scmp.ge.s32.totalorder %s13_s9, 5  }
 0x21c   :  { %12 = sbr.rel (!%p10_p7) target bundleno = 1 (0x1), region = 69 }
 0x221   :  { %242 = vsyncpa [#allocation4], 1 }
 0x222   :  { %244 = vsyncpa [#allocation4 + $0x1], 1 }

</bundles_post_ra>
